<compile_context>
chip_gen: v7x
topology: tpu7x:2x2x1
jax: 0.10.0
libtpu: 0.0.40
codegen_flags: <defaults>
</compile_context>

<pallas_src>
import functools

import jax
import jax.numpy as jnp
from jax.experimental import pallas as pl
from jax.experimental.pallas import tpu as pltpu

NUM_CLASSES = 26
GAMMA = 2.0
EPS = 1e-8

TILE_ROWS = 2048        # batch rows per grid step (raise for very large B;
                        # vmem_limit_bytes below leaves headroom for ~8192)


def _round_up(x, m):
    return (x + m - 1) // m * m


def _focal_loss_kernel(pred_ref, target_ref, o_ref, *, gamma, batch,
                       block_rows, mask_tail, hard_targets):
    """One (TB, C) tile in native layout -> (1, 1, C) per-class partial sum."""
    x = pred_ref[...].astype(jnp.float32)      # (TB, C) logits
    t = target_ref[...].astype(jnp.float32)    # (TB, C) multi-hot targets

    p = jax.nn.sigmoid(x)
    pt = p * t + (1.0 - p) * (1.0 - t)
    one_m_pt = 1.0 - pt

    # focal weight (1 - pt) ** gamma, specialized at trace time.
    g = float(gamma)
    if g == 2.0:
        fw = one_m_pt * one_m_pt                      # VALU square, no EUP
    elif g.is_integer() and 1.0 <= g <= 8.0:
        fw = one_m_pt
        for _ in range(int(g) - 1):
            fw = fw * one_m_pt
    else:
        fw = jnp.power(one_m_pt, g)                   # fallback (EUP exp/log)

    if hard_targets:
        # Bit-identical to the two-log form when targets are exactly 0/1
        # (pt == p for t=1, pt == 1-p for t=0); one log instead of two.
        loss = -jnp.log(pt + EPS)
    else:
        loss = -(t * jnp.log(p + EPS) + (1.0 - t) * jnp.log(1.0 - p + EPS))

    contrib = loss * fw

    if mask_tail:
        # Mask rows past the real batch (boundary block contents are garbage).
        row0 = pl.program_id(0) * block_rows
        rows = jax.lax.broadcasted_iota(jnp.int32, contrib.shape, 0) + row0
        contrib = jnp.where(rows < batch, contrib, 0.0)

    # Per-class partial sum for this tile (class weights applied in wrapper).
    o_ref[...] = jnp.sum(contrib, axis=0, keepdims=True).reshape(o_ref.shape)


def _focal_loss_dense(pred, target, w, gamma, hard_targets):
    """Plain-JAX path for tiny batches (w already includes alpha)."""
    p = jax.nn.sigmoid(pred.astype(jnp.float32))
    t = target.astype(jnp.float32)
    pt = p * t + (1.0 - p) * (1.0 - t)
    fw = (1.0 - pt) ** gamma
    if hard_targets:
        loss = -jnp.log(pt + EPS)
    else:
        loss = -(t * jnp.log(p + EPS) + (1.0 - t) * jnp.log(1.0 - p + EPS))
    return jnp.sum(loss * fw * w)


def focal_loss(pred, target, weights, *, gamma=GAMMA, alpha=None,
               tile_rows=TILE_ROWS, hard_targets=True, min_pallas_rows=64):
    """pred, target: (B, C) in any float/int dtype; weights: (1, C).

    Returns the scalar f32 focal-loss sum, matching FocalLoss.forward.
    """
    B, C = pred.shape
    assert target.shape == (B, C) and weights.shape[-1] == C

    w = jnp.asarray(weights, jnp.float32).reshape(1, C)
    if alpha is not None:
        # loss * (alpha*fw) * weights == loss * fw * (alpha*weights)
        w = w * jnp.asarray(alpha, dtype=jnp.float32).reshape(1, C)

    if B < min_pallas_rows:
        # Kernel launch + boundary handling dominates at tiny B.
        return _focal_loss_dense(pred, target, w, gamma, hard_targets)

    # Batch tiling on the sublane axis; multiple of 32 keeps the block legal
    # for f32 / bf16 / int8 packing.  A single full-extent block needs no mask.
    tb = _round_up(min(tile_rows, B), 32)
    if tb >= B:
        tb = B
    n_tiles = pl.cdiv(B, tb)
    mask_tail = (n_tiles * tb) != B

    partials = pl.pallas_call(
        functools.partial(_focal_loss_kernel, gamma=gamma, batch=B,
                          block_rows=tb, mask_tail=mask_tail,
                          hard_targets=hard_targets),
        out_shape=jax.ShapeDtypeStruct((n_tiles, 1, C), jnp.float32),
        grid_spec=pltpu.PrefetchScalarGridSpec(
            num_scalar_prefetch=0,
            grid=(n_tiles,),
            in_specs=[
                pl.BlockSpec((tb, C), lambda i: (i, 0)),
                pl.BlockSpec((tb, C), lambda i: (i, 0)),
            ],
            out_specs=pl.BlockSpec((1, 1, C), lambda i: (i, 0, 0)),
        ),
        compiler_params=pltpu.CompilerParams(
            dimension_semantics=("parallel",),
            vmem_limit_bytes=48 * 1024 * 1024),
    )(pred, target)

    per_class = jnp.sum(partials.reshape(n_tiles, C), axis=0)   # (C,)
    return jnp.sum(per_class * w.reshape(C))


def _focal_loss_ref(pred, target, weights, gamma=GAMMA, alpha=None):
    """Direct transcription of FocalLoss.forward (two-log form)."""
    p = jax.nn.sigmoid(pred.astype(jnp.float32))
    t = target.astype(jnp.float32)
    pt = p * t + (1.0 - p) * (1.0 - t)
    fw = (1.0 - pt) ** gamma
    if alpha is not None:
        fw = jnp.asarray(alpha, jnp.float32).reshape(1, -1) * fw
    loss = -(t * jnp.log(p + EPS) + (1.0 - t) * jnp.log(1.0 - p + EPS))
    return jnp.sum(loss * fw * weights)


if __name__ == "__main__":
    key = jax.random.PRNGKey(0)

    # weight_type='mean' -> ones(1, 26) / 26  (deterministic, as in __init__)
    weights = jnp.ones((1, NUM_CLASSES), dtype=jnp.float32) / float(NUM_CLASSES)

    # (batch, tile_rows override, pred dtype)
    #   B=4    -> tiny-batch plain-JAX fallback
    #   B=200  -> Pallas, single full-extent block, f32 logits + int8 targets
    #   B=1500 -> Pallas, 3 tiles + ragged-tail mask, bf16 logits + int8 targets
    cases = [
        (4, None, jnp.float32),
        (200, None, jnp.float32),
        (1500, 512, jnp.bfloat16),
    ]
    for B, tr, pdt in cases:
        key, k_pred, k_tgt = jax.random.split(key, 3)
        pred = (jax.random.normal(k_pred, (B, NUM_CLASSES), jnp.float32)
                * 3.0).astype(pdt)
        target = jax.random.bernoulli(
            k_tgt, 0.3, (B, NUM_CLASSES)).astype(jnp.int8)   # narrow HBM dtype

        kwargs = {} if tr is None else {"tile_rows": tr}
        out = jax.block_until_ready(focal_loss(pred, target, weights, **kwargs))
        ref = _focal_loss_ref(pred.astype(jnp.float32),
                              target.astype(jnp.float32), weights)
        assert jnp.allclose(out, ref, rtol=1e-4, atol=1e-4), (B, out, ref)

    print("KERNEL_OK")
</pallas_src>

<mosaic_0001>
module attributes {stable_mosaic.version = 11 : i64} {
  func.func @_focal_loss_kernel(%arg0: i32, %arg1: memref<200x26xf32, #tpu.memory_space<vmem>>, %arg2: memref<200x26xi8, #tpu.memory_space<vmem>>, %arg3: memref<1x1x26xf32, #tpu.memory_space<vmem>>) attributes {dimension_semantics = [#tpu.dimension_semantics<parallel>], iteration_bounds = array<i64: 1>, scalar_prefetch = 0 : i64, scratch_operands = 0 : i64, tpu.core_type = #tpu.core_type<tc>, window_params = [{transform_indices = @transform_0, window_bounds = array<i64: 200, 26>}, {transform_indices = @transform_1, window_bounds = array<i64: 200, 26>}, {transform_indices = @transform_2, window_bounds = array<i64: 1, 1, 26>}]} {
    %c0 = arith.constant 0 : index
    %c0_0 = arith.constant 0 : index
    %0 = vector.load %arg1[%c0, %c0_0] : memref<200x26xf32, #tpu.memory_space<vmem>>, vector<200x26xf32>
    %c0_1 = arith.constant 0 : index
    %c0_2 = arith.constant 0 : index
    %1 = vector.load %arg2[%c0_1, %c0_2] : memref<200x26xi8, #tpu.memory_space<vmem>>, vector<200x26xi8>
    %2 = arith.sitofp %1 : vector<200x26xi8> to vector<200x26xf32>
    %3 = arith.negf %0 : vector<200x26xf32>
    %4 = math.exp %3 : vector<200x26xf32>
    %cst = arith.constant 1.000000e+00 : f32
    %5 = vector.broadcast %cst : f32 to vector<200x26xf32>
    %6 = arith.addf %5, %4 : vector<200x26xf32>
    %7 = arith.divf %5, %6 : vector<200x26xf32>
    %8 = arith.mulf %7, %2 : vector<200x26xf32>
    %cst_3 = arith.constant 1.000000e+00 : f32
    %9 = vector.broadcast %cst_3 : f32 to vector<200x26xf32>
    %10 = arith.subf %9, %7 : vector<200x26xf32>
    %cst_4 = arith.constant 1.000000e+00 : f32
    %11 = vector.broadcast %cst_4 : f32 to vector<200x26xf32>
    %12 = arith.subf %11, %2 : vector<200x26xf32>
    %13 = arith.mulf %10, %12 : vector<200x26xf32>
    %14 = arith.addf %8, %13 : vector<200x26xf32>
    %cst_5 = arith.constant 1.000000e+00 : f32
    %15 = vector.broadcast %cst_5 : f32 to vector<200x26xf32>
    %16 = arith.subf %15, %14 : vector<200x26xf32>
    %17 = arith.mulf %16, %16 : vector<200x26xf32>
    %cst_6 = arith.constant 9.99999993E-9 : f32
    %18 = vector.broadcast %cst_6 : f32 to vector<200x26xf32>
    %19 = arith.addf %14, %18 : vector<200x26xf32>
    %20 = math.log %19 : vector<200x26xf32>
    %cst_7 = arith.constant 0.000000e+00 : f32
    %21 = vector.broadcast %cst_7 : f32 to vector<200x26xf32>
    %22 = arith.subf %21, %20 : vector<200x26xf32>
    %23 = arith.mulf %22, %17 : vector<200x26xf32>
    %cst_8 = arith.constant dense<0.000000e+00> : vector<26xf32>
    %24 = vector.multi_reduction <add>, %23, %cst_8 [0] : vector<200x26xf32> to vector<26xf32>
    %25 = vector.shape_cast %24 : vector<26xf32> to vector<1x26xf32>
    %26 = vector.shape_cast %25 : vector<1x26xf32> to vector<1x1x26xf32>
    %c0_9 = arith.constant 0 : index
    %c0_10 = arith.constant 0 : index
    %c0_11 = arith.constant 0 : index
    %27 = vector.load %arg3[%c0_9, %c0_10, %c0_11] : memref<1x1x26xf32, #tpu.memory_space<vmem>>, vector<1x1x26xf32>
    tpu.vector_store %arg3[%c0_9, %c0_10, %c0_11], %26 {strides = array<i32>} : memref<1x1x26xf32, #tpu.memory_space<vmem>>, vector<1x1x26xf32>,
    return
  }
  func.func @transform_0(%arg0: i32) -> (i32, i32) {
    %c0_i32 = arith.constant 0 : i32
    %c0_i32_0 = arith.constant 0 : i32
    return %arg0, %c0_i32 : i32, i32
  }
  func.func @transform_1(%arg0: i32) -> (i32, i32) {
    %c0_i32 = arith.constant 0 : i32
    %c0_i32_0 = arith.constant 0 : i32
    return %arg0, %c0_i32 : i32, i32
  }
  func.func @transform_2(%arg0: i32) -> (i32, i32, i32) {
    %c0_i32 = arith.constant 0 : i32
    %c0_i32_0 = arith.constant 0 : i32
    %c0_i32_1 = arith.constant 0 : i32
    return %arg0, %c0_i32, %c0_i32_0 : i32, i32, i32
  }
}

</mosaic_0001>

<bundles_post_ra>
// kernel: tpu_custom_call.1
= control target key start
LH: loop header
LB: loop body
LE: loop exit
PB: predicated region body
PF: predicated region fallthrough
CT: control target
= control target key end

     0   :  { %7 = vsyncpa [#allocation3], 0  ;;  %vm562_vm0 = vcmask 211968   ;;  %vm618_vm1 = vcmask 204800   ;;  %s1458_s0 = inlined_call_operand.vmem [shape: f32[200,26], index: 0, kind: input, shape index: {}]   ;;  %s1459_s1 = inlined_call_operand.vmem [shape: s8[200,26], index: 1, kind: input, shape index: {}]   ;;  %s1460_s2 = inlined_call_operand.hbm [shape: f32[1,1,26], index: 2, kind: output, shape index: {}]  }
   0x1   :  { %v12_v0 = vld [vmem:[%s1458_s0] sm:$0xff]  ;;  %v13_v1 = vld [vmem:[%s1458_s0 + $0x8] sm:$0xff]  ;;  %v14_v2 = vld [vmem:[%s1458_s0 + $0x10] sm:$0xff] }
   0x2   :  { %v15_v3 = vld [vmem:[%s1458_s0 + $0x18] sm:$0xff]  ;;  %v634_v4 = vmul.f32 -1.442695, %v12_v0  ;;  %v16_v5 = vld [vmem:[%s1458_s0 + $0x20] sm:$0xff]  ;;  %v635_v6 = vmul.f32 -1.442695, %v13_v1 }
   0x3   :  { %v17_v7 = vld [vmem:[%s1458_s0 + $0x28] sm:$0xff]  ;;  %v636_v8 = vmul.f32 -1.442695, %v14_v2  ;;  %v637_v9 = vmul.f32 -1.442695, %v15_v3  ;;  %v18_v11 = vld [vmem:[%s1458_s0 + $0x30] sm:$0xff] }
   0x4   :  { %719 = vpow2.f32 %v634_v4  ;;  %v638_v10 = vmul.f32 -1.442695, %v16_v5  ;;  %v639_v12 = vmul.f32 -1.442695, %v17_v7  ;;  %v19_v13 = vld [vmem:[%s1458_s0 + $0x38] sm:$0xff]  ;;  %v936_v14 = vld [vmem:[%s1459_s1] sm:$0xff]  }
   0x5   :  { %721 = vpow2.f32 %v635_v6  ;;  %v20_v15 = vld [vmem:[%s1458_s0 + $0x40] sm:$0xff]  ;;  %v21_v16 = vld [vmem:[%s1458_s0 + $0x48] sm:$0xff]  ;;  %v640_v18 = vmul.f32 -1.442695, %v18_v11  ;;  %v22_v19 = vld [vmem:[%s1458_s0 + $0x50] sm:$0xff]  ;;  %v661_v20 = vunpack.c.0.s8 %v936_v14  ;;  %v662_v24 = vunpack.c.1.s8 %v936_v14 }
   0x6   :  { %723 = vpow2.f32 %v636_v8  ;;  %v947_v17 = vld [vmem:[%s1459_s1 + $0x8] sm:$0xff]   ;;  %v956_v21 = vld [vmem:[%s1459_s1 + $0x10] sm:$0xff]   ;;  %v641_v22 = vmul.f32 -1.442695, %v19_v13  ;;  %v23_v23 = vld [vmem:[%s1458_s0 + $0x58] sm:$0xff]  ;;  %v665_v25 = vunpack.c.2.s8 %v936_v14  ;;  %v666_v26 = vunpack.c.3.s8 %v936_v14 }
   0x7   :  { %725 = vpow2.f32 %v637_v9  ;;  %v642_v27 = vmul.f32 -1.442695, %v20_v15  ;;  %v24_v28 = vld [vmem:[%s1458_s0 + $0x60] sm:$0xff]  ;;  %v669_v29 = vunpack.c.0.s8 %v947_v17  ;;  %v670_v30 = vunpack.c.1.s8 %v947_v17  ;;  %v973_v32 = vld [vmem:[%s1459_s1 + $0x18] sm:$0xff]   ;;  %v25_v34 = vld [vmem:[%s1458_s0 + $0x68] sm:$0xff] }
   0x8   :  { %727 = vpow2.f32 %v638_v10  ;;  %v673_v31 = vunpack.c.2.s8 %v947_v17  ;;  %v643_v33 = vmul.f32 -1.442695, %v21_v16  ;;  %v674_v35 = vunpack.c.3.s8 %v947_v17  ;;  %v26_v38 = vld [vmem:[%s1458_s0 + $0x70] sm:$0xff]  ;;  %v988_v41 = vld [vmem:[%s1459_s1 + $0x20] sm:$0xff]   ;;  %v27_v44 = vld [vmem:[%s1458_s0 + $0x78] sm:$0xff] }
   0x9   :  { %729 = vpow2.f32 %v639_v12  ;;  %v677_v36 = vunpack.c.0.s8 %v956_v21  ;;  %v644_v37 = vmul.f32 -1.442695, %v22_v19  ;;  %v678_v39 = vunpack.c.1.s8 %v956_v21  ;;  %v28_v49 = vld [vmem:[%s1458_s0 + $0x80] sm:$0xff]  ;;  %v1007_v52 = vld [vmem:[%s1459_s1 + $0x28] sm:$0xff]   ;;  %v30_v60 = vld [vmem:[%s1458_s0 + $0x90] sm:$0xff] }
   0xa   :  { %731 = vpow2.f32 %v640_v18  ;;  %v681_v40 = vunpack.c.2.s8 %v956_v21  ;;  %v645_v42 = vmul.f32 -1.442695, %v23_v23  ;;  %v682_v45 = vunpack.c.3.s8 %v956_v21  ;;  %v29_v55 = vld [vmem:[%s1458_s0 + $0x88] sm:$0xff]  ;;  %v1026_v63 = vld [vmem:[%s1459_s1 + $0x30] sm:$0x3]  ;;  %v31_v2 = vld [vmem:[%s1458_s0 + $0x98] sm:$0xff] }
   0xb   :  { %733 = vpow2.f32 %v641_v22  ;;  %v685_v46 = vunpack.c.0.s8 %v973_v32  ;;  %v646_v47 = vmul.f32 -1.442695, %v24_v28  ;;  %v686_v50 = vunpack.c.1.s8 %v973_v32  ;;  %v32_v7 = vld [vmem:[%s1458_s0 + $0xa0] sm:$0xff]  ;;  %v33_v11 = vld [vmem:[%s1458_s0 + $0xa8] sm:$0xff]  ;;  %v34_v16 = vld [vmem:[%s1458_s0 + $0xb0] sm:$0xff] }
   0xc   :  { %735 = vpow2.f32 %v642_v27  ;;  %v689_v51 = vunpack.c.2.s8 %v973_v32  ;;  %v647_v53 = vmul.f32 -1.442695, %v25_v34  ;;  %v690_v56 = vunpack.c.3.s8 %v973_v32  ;;  %v35_v27 = vld [vmem:[%s1458_s0 + $0xb8] sm:$0xff] }
   0xd   :  { %737 = vpow2.f32 %v643_v33  ;;  %v693_v57 = vunpack.c.0.s8 %v988_v41  ;;  %v648_v58 = vmul.f32 -1.442695, %v26_v38  ;;  %v694_v61 = vunpack.c.1.s8 %v988_v41 }
   0xe   :  { %v990_v43 = vpop.eup %719  ;;  %739 = vpow2.f32 %v644_v37  ;;  %v697_v62 = vunpack.c.2.s8 %v988_v41  ;;  %v649_v0 = vmul.f32 -1.442695, %v27_v44  ;;  %v698_v3 = vunpack.c.3.s8 %v988_v41 }
   0xf   :  { %v997_v48 = vpop.eup %721  ;;  %741 = vpow2.f32 %v645_v42  ;;  %v701_v4 = vunpack.c.0.s8 %v1007_v52  ;;  %v650_v5 = vmul.f32 -1.442695, %v28_v49  ;;  %v702_v8 = vunpack.c.1.s8 %v1007_v52 }
  0x10   :  { %v1009_v54 = vpop.eup %723  ;;  %743 = vpow2.f32 %v646_v47  ;;  %v705_v9 = vunpack.c.2.s8 %v1007_v52  ;;  %v651_v10 = vmul.f32 -1.442695, %v29_v55  ;;  %v706_v12 = vunpack.c.3.s8 %v1007_v52 }
  0x11   :  { %v1016_v59 = vpop.eup %725  ;;  %745 = vpow2.f32 %v647_v53  ;;  %v86_v13 = vunpack.c.0.s8 %v1026_v63  ;;  %v652_v15 = vmul.f32 -1.442695, %v30_v60  ;;  %v1052_v18 = vcvt.s32.f32 %v661_v20 }
  0x12   :  { %v1028_v1 = vpop.eup %727  ;;  %747 = vpow2.f32 %v648_v58  ;;  %v1056_v19 = vcvt.s32.f32 %v662_v24  ;;  %v653_v22 = vmul.f32 -1.442695, %v31_v2  ;;  %v1063_v28 = vcvt.s32.f32 %v665_v25  ;;  %v36_v24 = vld [vmem:[%s1458_s0 + $0xc0] sm:$0xff]  ;;  %s893_s0 = smov [#allocation2]  }
  0x13   :  { %v1035_v6 = vpop.eup %729  ;;  %749 = vpow2.f32 %v649_v0  ;;  %v1067_v33 = vcvt.s32.f32 %v666_v26  ;;  %v654_v20 = vmul.f32 -1.442695, %v32_v7  ;;  %v1074_v37 = vcvt.s32.f32 %v669_v29  ;;  %s626_s16 = sshll.u32 %s893_s0, 4  ;;  %s627_s16 = int_to_ptr.vmem [resolvable:$true] %s626_s16 }
  0x14   :  { %v732_v23 = vpop.eup %731  ;;  %751 = vpow2.f32 %v650_v5  ;;  %v1078_v38 = vcvt.s32.f32 %v670_v30  ;;  %v655_v25 = vmul.f32 -1.442695, %v33_v11  ;;  %v1082_v26 = vcvt.s32.f32 %v673_v31  ;;  %s869_s17 = scalar_lea.vmem %s627_s16, 16  ;;  %s873_s18 = scalar_lea.vmem %s627_s16, 32 }
  0x15   :  { %v734_v34 = vpop.eup %733  ;;  %753 = vpow2.f32 %v651_v10  ;;  %v1086_v42 = vcvt.s32.f32 %v674_v35  ;;  %v656_v44 = vmul.f32 -1.442695, %v34_v16  ;;  %v1090_v29 = vcvt.s32.f32 %v677_v36  ;;  %p870_p0 = scmp.ne.s32.totalorder %s627_s16, %s869_s17  ;;  %p874_p1 = scmp.lt.s32.totalorder %s627_s16, %s627_s16 }
  0x16   :  { %v736_v14 = vpop.eup %735  ;;  %755 = vpow2.f32 %v652_v15  ;;  %v1094_v30 = vcvt.s32.f32 %v678_v39  ;;  %v657_v49 = vmul.f32 -1.442695, %v35_v27  ;;  %v1098_v31 = vcvt.s32.f32 %v681_v40  ;;  %p875_p2 = scmp.lt.s32.totalorder %s873_s18, %s869_s17 }
  0x17   :  { %v738_v47 = vpop.eup %737  ;;  %757 = vpow2.f32 %v653_v22  ;;  %v1102_v17 = vcvt.s32.f32 %v682_v45  ;;  %v658_v35 = vmul.f32 -1.442695, %v36_v24  ;;  %v1106_v36 = vcvt.s32.f32 %v685_v46 }
  0x18   :  { %v740_v53 = vpop.eup %739  ;;  %759 = vpow2.f32 %v654_v20  ;;  %v1110_v39 = vcvt.s32.f32 %v686_v50  ;;  %v187_v58 = vadd.f32 1.0, %v990_v43  ;;  %v1115_v21 = vcvt.s32.f32 %v689_v51  ;;  %p876_p3 = por %p875_p2, %p874_p1 }
  0x19   :  { %v742_v55 = vpop.eup %741  ;;  %761 = vpow2.f32 %v655_v25  ;;  %v1119_v45 = vcvt.s32.f32 %v690_v56  ;;  %v188_v46 = vadd.f32 1.0, %v997_v48  ;;  %v1124_v50 = vcvt.s32.f32 %v693_v57 }
  0x1a   :  { %v744_v40 = vpop.eup %743  ;;  %763 = vpow2.f32 %v656_v44  ;;  %v1128_v43 = vcvt.s32.f32 %v694_v61  ;;  %v189_v51 = vadd.f32 1.0, %v1009_v54  ;;  %v1133_v32 = vcvt.s32.f32 %v697_v62  ;;  %p877_p4 = pnand %p876_p3, %p870_p0 }
  0x1b   :  { %v746_v60 = vpop.eup %745  ;;  %765 = vpow2.f32 %v657_v49  ;;  %v1137_v48 = vcvt.s32.f32 %v698_v3  ;;  %v190_v56 = vadd.f32 1.0, %v1016_v59  ;;  %v1142_v61 = vcvt.s32.f32 %v701_v4 }
  0x1c   :  { %v748_v0 = vpop.eup %747  ;;  %767 = vpow2.f32 %v658_v35  ;;  %v1144_v2 = vcvt.s32.f32 %v702_v8  ;;  %v191_v54 = vadd.f32 1.0, %v1028_v1  ;;  %v1149_v62 = vcvt.s32.f32 %v705_v9 }
  0x1d   :  { %v750_v57 = vpop.eup %749  ;;  %769 = vrcp.f32 %v187_v58  ;;  %v1151_v41 = vcvt.s32.f32 %v706_v12  ;;  %v192_v3 = vadd.f32 1.0, %v1035_v6  ;;  %v1156_v4 = vcvt.s32.f32 %v86_v13 }
  0x1e   :  { %v752_v5 = vpop.eup %751  ;;  %771 = vrcp.f32 %v188_v46  ;;  %v193_v7 = vadd.f32 1.0, %v732_v23  ;;  %v312_v1 = vsub.f32 1.0, %v1052_v18  ;;  %v194_v10 = vadd.f32 1.0, %v734_v34 }
  0x1f   :  { %v754_v59 = vpop.eup %753  ;;  %773 = vrcp.f32 %v189_v51  ;;  %v313_v52 = vsub.f32 1.0, %v1056_v19  ;;  %v314_v9 = vsub.f32 1.0, %v1063_v28  ;;  %v195_v12 = vadd.f32 1.0, %v736_v14 }
  0x20   :  { %v756_v8 = vpop.eup %755  ;;  %775 = vrcp.f32 %v190_v56  ;;  %v315_v6 = vsub.f32 1.0, %v1067_v33  ;;  %v316_v63 = vsub.f32 1.0, %v1074_v37  ;;  %v196_v15 = vadd.f32 1.0, %v738_v47 }
  0x21   :  { %v758_v11 = vpop.eup %757  ;;  %777 = vrcp.f32 %v191_v54  ;;  %v317_v16 = vsub.f32 1.0, %v1078_v38  ;;  %v318_v22 = vsub.f32 1.0, %v1082_v26  ;;  %v197_v27 = vadd.f32 1.0, %v740_v53 }
  0x22   :  { %v760_v13 = vpop.eup %759  ;;  %779 = vrcp.f32 %v192_v3  ;;  %v319_v20 = vsub.f32 1.0, %v1086_v42  ;;  %v198_v25 = vadd.f32 1.0, %v742_v55  ;;  %v199_v49 = vadd.f32 1.0, %v744_v40 }
  0x23   :  { %v762_v23 = vpop.eup %761  ;;  %781 = vrcp.f32 %v193_v7  ;;  %v200_v46 = vadd.f32 1.0, %v746_v60  ;;  %v201_v54 = vadd.f32 1.0, %v748_v0  ;;  %v207_v35 = vadd.f32 1.0, %v760_v13 }
  0x24   :  { %v764_v24 = vpop.eup %763  ;;  %783 = vrcp.f32 %v194_v10  ;;  %v202_v10 = vadd.f32 1.0, %v750_v57  ;;  %v208_v44 = vadd.f32 1.0, %v762_v23 }
  0x25   :  { %v766_v47 = vpop.eup %765  ;;  %785 = vrcp.f32 %v195_v12 }
  0x26   :  { %v768_v53 = vpop.eup %767  ;;  %787 = vrcp.f32 %v196_v15  ;;  %v203_v15 = vadd.f32 1.0, %v752_v5  ;;  %v210_v14 = vadd.f32 1.0, %v766_v47 }
  0x27   :  { %v770_v55 = vpop.eup %769  ;;  %789 = vrcp.f32 %v197_v27  ;;  %v204_v27 = vadd.f32 1.0, %v754_v59  ;;  %v209_v59 = vadd.f32 1.0, %v764_v24  ;;  %v211_v34 = vadd.f32 1.0, %v768_v53 }
  0x28   :  { %v772_v40 = vpop.eup %771  ;;  %791 = vrcp.f32 %v198_v25  ;;  %v205_v25 = vadd.f32 1.0, %v756_v8  ;;  %v287_v51 = vsub.f32 1.0, %v770_v55  ;;  %v262_v12 = vmul.f32 %v770_v55, %v1052_v18 }
  0x29   :  { %v774_v60 = vpop.eup %773  ;;  %793 = vrcp.f32 %v199_v49  ;;  %v206_v49 = vadd.f32 1.0, %v758_v11  ;;  %v1185_v58 = vmul.f32 %v772_v40, %v1056_v19 }
  0x2a   :  { %v776_v0 = vpop.eup %775  ;;  %795 = vrcp.f32 %v200_v46  ;;  %v288_v46 = vsub.f32 1.0, %v772_v40  ;;  %v289_v7 = vsub.f32 1.0, %v774_v60  ;;  %v1188_v23 = vmul.f32 %v774_v60, %v1063_v28 }
  0x2b   :  { %v778_v57 = vpop.eup %777  ;;  %797 = vrcp.f32 %v201_v54  ;;  %v290_v8 = vsub.f32 1.0, %v776_v0  ;;  %v337_v47 = vmul.f32 %v312_v1, %v287_v51 }
  0x2c   :  { %v780_v5 = vpop.eup %779  ;;  %799 = vrcp.f32 %v202_v10  ;;  %v291_v11 = vsub.f32 1.0, %v778_v57  ;;  %v1196_v53 = vmul.f32 %v778_v57, %v1074_v37  ;;  %v338_v55 = vmul.f32 %v313_v52, %v288_v46 }
  0x2d   :  { %v782_v56 = vpop.eup %781  ;;  %801 = vrcp.f32 %v203_v15  ;;  %v292_v24 = vsub.f32 1.0, %v780_v5  ;;  %v1193_v15 = vmul.f32 %v776_v0, %v1067_v33  ;;  %v339_v18 = vmul.f32 %v314_v9, %v289_v7 }
  0x2e   :  { %v784_v3 = vpop.eup %783  ;;  %803 = vrcp.f32 %v204_v27  ;;  %v1201_v27 = vmul.f32 %v780_v5, %v1078_v38  ;;  %v293_v60 = vsub.f32 1.0, %v782_v56  ;;  %v340_v1 = vmul.f32 %v315_v6, %v290_v8 }
  0x2f   :  { %v786_v54 = vpop.eup %785  ;;  %805 = vrcp.f32 %v205_v25  ;;  %v1208_v0 = vmul.f32 %v782_v56, %v1082_v26  ;;  %v294_v57 = vsub.f32 1.0, %v784_v3  ;;  %v341_v19 = vmul.f32 %v316_v63, %v291_v11 }
  0x30   :  { %v788_v13 = vpop.eup %787  ;;  %807 = vrcp.f32 %v206_v49  ;;  %v1213_v25 = vmul.f32 %v784_v3, %v1086_v42  ;;  %v295_v5 = vsub.f32 1.0, %v786_v54  ;;  %v342_v28 = vmul.f32 %v317_v16, %v292_v24 }
  0x31   :  { %v790_v10 = vpop.eup %789  ;;  %809 = vrcp.f32 %v207_v35  ;;  %v1218_v9 = vmul.f32 %v786_v54, %v1090_v29  ;;  %v296_v6 = vsub.f32 1.0, %v788_v13  ;;  %v1221_v37 = vmul.f32 %v788_v13, %v1094_v30 }
  0x32   :  { %v792_v40 = vpop.eup %791  ;;  %811 = vrcp.f32 %v208_v44  ;;  %v297_v35 = vsub.f32 1.0, %v790_v10  ;;  %v343_v44 = vmul.f32 %v318_v22, %v293_v60  ;;  %v1226_v38 = vmul.f32 %v790_v10, %v1098_v31 }
  0x33   :  { %v794_v51 = vpop.eup %793  ;;  %813 = vrcp.f32 %v209_v59  ;;  %v298_v63 = vsub.f32 1.0, %v792_v40  ;;  %v344_v7 = vmul.f32 %v319_v20, %v294_v57  ;;  %v1231_v59 = vmul.f32 %v792_v40, %v1102_v17 }
  0x34   :  { %v796_v52 = vpop.eup %795  ;;  %815 = vrcp.f32 %v210_v14  ;;  %v299_v16 = vsub.f32 1.0, %v794_v51  ;;  %v1461_v8 = vsub.f32 1.0, %v1090_v29  ;;  %v1236_v26 = vmul.f32 %v794_v51, %v1106_v36 }
  0x35   :  { %v798_v33 = vpop.eup %797  ;;  %817 = vrcp.f32 %v211_v34  ;;  %v300_v14 = vsub.f32 1.0, %v796_v52  ;;  %v1462_v34 = vsub.f32 1.0, %v1094_v30  ;;  %v1463_v13 = vsub.f32 1.0, %v1098_v31 }
  0x36   :  { %v800_v56 = vpop.eup %799  ;;  %v301_v46 = vsub.f32 1.0, %v798_v33  ;;  %v345_v54 = vmul.f32 %v1461_v8, %v295_v5  ;;  %v1243_v24 = vmul.f32 %v796_v52, %v1110_v39  ;;  %v1246_v10 = vmul.f32 %v798_v33, %v1115_v21 }
  0x37   :  { %v802_v3 = vpop.eup %801  ;;  %v302_v22 = vsub.f32 1.0, %v800_v56  ;;  %v346_v11 = vmul.f32 %v1462_v34, %v296_v6  ;;  %v347_v42 = vmul.f32 %v1463_v13, %v297_v35  ;;  %v1464_v29 = vsub.f32 1.0, %v1102_v17 }
  0x38   :  { %v804_v49 = vpop.eup %803  ;;  %v303_v40 = vsub.f32 1.0, %v802_v3  ;;  %v277_v57 = vmul.f32 %v800_v56, %v1119_v45  ;;  %v1465_v30 = vsub.f32 1.0, %v1106_v36  ;;  %v1253_v31 = vadd.f32 %v337_v47, %v262_v12 }
  0x39   :  { %v806_v20 = vpop.eup %805  ;;  %v348_v60 = vmul.f32 %v1464_v29, %v298_v63  ;;  %v304_v5 = vsub.f32 1.0, %v804_v49  ;;  %v278_v35 = vmul.f32 %v802_v3, %v1124_v50  ;;  %v1466_v52 = vsub.f32 1.0, %v1110_v39 }
  0x3a   :  { %v808_v51 = vpop.eup %807  ;;  %v349_v6 = vmul.f32 %v1465_v30, %v299_v16  ;;  %v1467_v33 = vsub.f32 1.0, %v1115_v21  ;;  %v1261_v17 = vadd.f32 %v338_v55, %v1185_v58  ;;  %v279_v56 = vmul.f32 %v804_v49, %v1128_v43 }
  0x3b   :  { %v350_v8 = vmul.f32 %v1466_v52, %v300_v14  ;;  %v810_v63 = vpop.eup %809  ;;  %v305_v13 = vsub.f32 1.0, %v806_v20  ;;  %v1468_v36 = vsub.f32 1.0, %v1119_v45  ;;  %v1267_v12 = vadd.f32 %v339_v18, %v1188_v23 }
  0x3c   :  { %v351_v34 = vmul.f32 %v1467_v33, %v301_v46  ;;  %v812_v47 = vpop.eup %811  ;;  %v280_v39 = vmul.f32 %v806_v20, %v1133_v32  ;;  %v306_v3 = vsub.f32 1.0, %v808_v51  ;;  %v1469_v21 = vsub.f32 1.0, %v1124_v50 }
  0x3d   :  { %v352_v16 = vmul.f32 %v1468_v36, %v302_v22  ;;  %v1273_v58 = vadd.f32 %v340_v1, %v1193_v15  ;;  %v814_v55 = vpop.eup %813  ;;  %v281_v49 = vmul.f32 %v808_v51, %v1137_v48  ;;  %v1470_v46 = vsub.f32 1.0, %v1128_v43 }
  0x3e   :  { %v353_v14 = vmul.f32 %v1469_v21, %v303_v40  ;;  %v1279_v22 = vadd.f32 %v341_v19, %v1196_v53  ;;  %v1282_v23 = vadd.f32 %v342_v28, %v1201_v27  ;;  %v816_v18 = vpop.eup %815  ;;  %v282_v20 = vmul.f32 %v810_v63, %v1142_v61 }
  0x3f   :  { %v354_v45 = vmul.f32 %v1470_v46, %v304_v5  ;;  %v307_v50 = vsub.f32 1.0, %v810_v63  ;;  %v437_v40 = vadd.f32 1e-08, %v1253_v31  ;;  %v438_v15 = vadd.f32 1e-08, %v1261_v17  ;;  %v818_v1 = vpop.eup %817 }
  0x40   :  { %v308_v29 = vsub.f32 1.0, %v812_v47  ;;  %v1471_v51 = vsub.f32 1.0, %v1133_v32  ;;  %v1290_v5 = vadd.f32 %v343_v44, %v1208_v0  ;;  %v439_v53 = vadd.f32 1e-08, %v1267_v12 }
  0x41   :  { %v283_v27 = vmul.f32 %v812_v47, %v1144_v2  ;;  %v309_v19 = vsub.f32 1.0, %v814_v55  ;;  %v1472_v28 = vsub.f32 1.0, %v1137_v48  ;;  %819 = vlog2.f32 %v437_v40 }
  0x42   :  { %v355_v43 = vmul.f32 %v1471_v51, %v305_v13  ;;  %v310_v52 = vsub.f32 1.0, %v816_v18  ;;  %v1297_v33 = vadd.f32 %v344_v7, %v1213_v25  ;;  %v440_v63 = vadd.f32 1e-08, %v1273_v58 }
  0x43   :  { %v356_v30 = vmul.f32 %v1472_v28, %v306_v3  ;;  %821 = vlog2.f32 %v438_v15  ;;  %v284_v32 = vmul.f32 %v814_v55, %v1149_v62  ;;  %v311_v0 = vsub.f32 1.0, %v818_v1 }
  0x44   :  { %v1473_v44 = vsub.f32 1.0, %v1142_v61  ;;  %v1304_v36 = vadd.f32 %v345_v54, %v1218_v9  ;;  %v285_v48 = vmul.f32 %v816_v18, %v1151_v41  ;;  %v1474_v47 = vsub.f32 1.0, %v1144_v2 }
  0x45   :  { %v441_v25 = vadd.f32 1e-08, %v1279_v22  ;;  %823 = vlog2.f32 %v439_v53  ;;  %v286_v7 = vmul.f32 %v818_v1, %v1156_v4  ;;  %v1475_v21 = vsub.f32 1.0, %v1149_v62 }
  0x46   :  { %v357_v13 = vmul.f32 %v1473_v44, %v307_v50  ;;  %v358_v3 = vmul.f32 %v1474_v47, %v308_v29  ;;  %v1314_v46 = vadd.f32 %v346_v11, %v1221_v37  ;;  %v1317_v61 = vadd.f32 %v347_v42, %v1226_v38 }
  0x47   :  { %v359_v55 = vmul.f32 %v1475_v21, %v309_v19  ;;  %v1476_v9 = vsub.f32 1.0, %v1151_v41  ;;  %v1322_v2 = vadd.f32 %v348_v60, %v1231_v59  ;;  %v442_v18 = vadd.f32 1e-08, %v1282_v23 }
  0x48   :  { %825 = vlog2.f32 %v440_v63  ;;  %v1477_v50 = vsub.f32 1.0, %v1156_v4  ;;  %v1328_v62 = vadd.f32 %v349_v6, %v1236_v26  ;;  %v1331_v37 = vadd.f32 %v350_v8, %v1243_v24 }
  0x49   :  { %v360_v54 = vmul.f32 %v1476_v9, %v310_v52  ;;  %v443_v38 = vadd.f32 1e-08, %v1290_v5  ;;  %v1335_v41 = vadd.f32 %v351_v34, %v1246_v10  ;;  %v1337_v11 = vadd.f32 %v352_v16, %v277_v57 }
  0x4a   :  { %v361_v40 = vmul.f32 %v1477_v50, %v311_v0  ;;  %v444_v59 = vadd.f32 1e-08, %v1297_v33  ;;  %827 = vlog2.f32 %v441_v25  ;;  %v1340_v42 = vadd.f32 %v353_v14, %v278_v35 }
  0x4b   :  { %v1342_v4 = vadd.f32 %v354_v45, %v279_v56  ;;  %v1344_v60 = vadd.f32 %v355_v43, %v280_v39  ;;  %v1346_v26 = vadd.f32 %v356_v30, %v281_v49  ;;  %v1348_v24 = vadd.f32 %v357_v13, %v282_v20  ;;  %v820_v57 = vpop.eup %819 }
  0x4c   :  { %v1350_v6 = vadd.f32 %v358_v3, %v283_v27  ;;  %v445_v10 = vadd.f32 1e-08, %v1304_v36  ;;  %829 = vlog2.f32 %v442_v18  ;;  %v1353_v8 = vadd.f32 %v359_v55, %v284_v32 }
  0x4d   :  { %v1355_v34 = vadd.f32 %v360_v54, %v285_v48  ;;  %v1357_v35 = vadd.f32 %v361_v40, %v286_v7  ;;  %831 = vlog2.f32 %v443_v38  ;;  %v822_v56 = vpop.eup %821  ;;  %v387_v16 = vsub.f32 1.0, %v1253_v31 }
  0x4e   :  { %v388_v39 = vsub.f32 1.0, %v1261_v17  ;;  %v446_v14 = vadd.f32 1e-08, %v1314_v46  ;;  %833 = vlog2.f32 %v444_v59  ;;  %v389_v49 = vsub.f32 1.0, %v1267_v12 }
  0x4f   :  { %v390_v45 = vsub.f32 1.0, %v1273_v58  ;;  %v391_v20 = vsub.f32 1.0, %v1279_v22  ;;  %v392_v15 = vsub.f32 1.0, %v1282_v23  ;;  %v824_v1 = vpop.eup %823  ;;  %v393_v29 = vsub.f32 1.0, %v1290_v5 }
  0x50   :  { %v447_v51 = vadd.f32 1e-08, %v1317_v61  ;;  %v463_v43 = vmul.f32 0.6931472, %v820_v57  ;;  %835 = vlog2.f32 %v445_v10  ;;  %v394_v31 = vsub.f32 1.0, %v1297_v33 }
  0x51   :  { %v395_v17 = vsub.f32 1.0, %v1304_v36  ;;  %v396_v53 = vsub.f32 1.0, %v1314_v46  ;;  %v465_v12 = vmul.f32 0.6931472, %v822_v56  ;;  %v397_v22 = vsub.f32 1.0, %v1317_v61 }
  0x52   :  { %v826_v58 = vpop.eup %825  ;;  %v398_v23 = vsub.f32 1.0, %v1322_v2  ;;  %v448_v27 = vadd.f32 1e-08, %v1322_v2  ;;  %837 = vlog2.f32 %v446_v14  ;;  %v399_v5 = vsub.f32 1.0, %v1328_v62 }
  0x53   :  { %v400_v19 = vsub.f32 1.0, %v1331_v37  ;;  %v401_v28 = vsub.f32 1.0, %v1335_v41  ;;  %v467_v30 = vmul.f32 0.6931472, %v824_v1  ;;  %v412_v33 = vmul.f32 %v387_v16, %v387_v16 }
  0x54   :  { %v828_v52 = vpop.eup %827  ;;  %v449_v63 = vadd.f32 1e-08, %v1328_v62  ;;  %839 = vlog2.f32 %v447_v51  ;;  %v512_v32 = vsub.f32 0.0, %v463_v43  ;;  %v413_v0 = vmul.f32 %v388_v39, %v388_v39 }
  0x55   :  { %v450_v44 = vadd.f32 1e-08, %v1331_v37  ;;  %v469_v13 = vmul.f32 0.6931472, %v826_v58  ;;  %v513_v36 = vsub.f32 0.0, %v465_v12  ;;  %v402_v47 = vsub.f32 1.0, %v1337_v11 }
  0x56   :  { %v830_v48 = vpop.eup %829  ;;  %v403_v3 = vsub.f32 1.0, %v1340_v42  ;;  %v414_v25 = vmul.f32 %v389_v49, %v389_v49  ;;  %841 = vlog2.f32 %v448_v27  ;;  %v415_v21 = vmul.f32 %v390_v45, %v390_v45 }
  0x57   :  { %v832_v7 = vpop.eup %831  ;;  %v416_v55 = vmul.f32 %v391_v20, %v391_v20  ;;  %v471_v46 = vmul.f32 0.6931472, %v828_v52  ;;  %v514_v9 = vsub.f32 0.0, %v467_v30  ;;  %v417_v18 = vmul.f32 %v392_v15, %v392_v15 }
  0x58   :  { %v834_v54 = vpop.eup %833  ;;  %v451_v50 = vadd.f32 1e-08, %v1335_v41  ;;  %843 = vlog2.f32 %v449_v63  ;;  %v537_v40 = vmul.f32 %v512_v32, %v412_v33  ;;  %v473_v38 = vmul.f32 0.6931472, %v830_v48 }
  0x59   :  { %845 = vlog2.f32 %v450_v44  ;;  %v515_v59 = vsub.f32 0.0, %v469_v13  ;;  %v538_v10 = vmul.f32 %v513_v36, %v413_v0  ;;  %v418_v56 = vmul.f32 %v393_v29, %v393_v29 }
  0x5a   :  { %v836_v57 = vpop.eup %835  ;;  %v419_v16 = vmul.f32 %v394_v31, %v394_v31  ;;  %v452_v39 = vadd.f32 1e-08, %v1337_v11  ;;  %v475_v14 = vmul.f32 0.6931472, %v832_v7  ;;  %v420_v49 = vmul.f32 %v395_v17, %v395_v17 }
  0x5b   :  { %v477_v45 = vmul.f32 0.6931472, %v834_v54  ;;  %v516_v20 = vsub.f32 0.0, %v471_v46  ;;  %v539_v1 = vmul.f32 %v514_v9, %v414_v25  ;;  %v421_v15 = vmul.f32 %v396_v53, %v396_v53 }
  0x5c   :  { %v838_v51 = vpop.eup %837  ;;  %v453_v43 = vadd.f32 1e-08, %v1340_v42  ;;  %847 = vlog2.f32 %v451_v50  ;;  %v563_v12 = vsel %vm562_vm0, %v537_v40, 0.0  ;;  %v479_v58 = vmul.f32 0.6931472, %v836_v57 }
  0x5d   :  { %v517_v27 = vsub.f32 0.0, %v473_v38  ;;  %v540_v30 = vmul.f32 %v515_v59, %v415_v21  ;;  %v564_v29 = vsel %vm562_vm0, %v538_v10, 0.0  ;;  %v454_v52 = vadd.f32 1e-08, %v1342_v4 }
  0x5e   :  { %v840_v31 = vpop.eup %839  ;;  %849 = vlog2.f32 %v452_v39  ;;  %v518_v17 = vsub.f32 0.0, %v475_v14  ;;  %v565_v33 = vadd.f32 %v564_v29, %v563_v12  ;;  %v481_v63 = vmul.f32 0.6931472, %v838_v51 }
  0x5f   :  { %v519_v32 = vsub.f32 0.0, %v477_v45  ;;  %v541_v0 = vmul.f32 %v516_v20, %v416_v55  ;;  %v566_v53 = vsel %vm562_vm0, %v539_v1, 0.0  ;;  %v422_v13 = vmul.f32 %v397_v22, %v397_v22 }
  0x60   :  { %v842_v44 = vpop.eup %841  ;;  %v455_v36 = vadd.f32 1e-08, %v1344_v60  ;;  %851 = vlog2.f32 %v453_v43  ;;  %v567_v48 = vadd.f32 %v566_v53, %v565_v33  ;;  %v483_v25 = vmul.f32 0.6931472, %v840_v31 }
  0x61   :  { %v520_v7 = vsub.f32 0.0, %v479_v58  ;;  %v542_v21 = vmul.f32 %v517_v27, %v417_v18  ;;  %v568_v46 = vsel %vm562_vm0, %v540_v30, 0.0  ;;  %v456_v54 = vadd.f32 1e-08, %v1346_v26 }
  0x62   :  { %v844_v9 = vpop.eup %843  ;;  %853 = vlog2.f32 %v454_v52  ;;  %v543_v55 = vmul.f32 %v518_v17, %v418_v56  ;;  %v569_v50 = vadd.f32 %v568_v46, %v567_v48  ;;  %v485_v38 = vmul.f32 0.6931472, %v842_v44 }
  0x63   :  { %v846_v40 = vpop.eup %845  ;;  %v521_v61 = vsub.f32 0.0, %v481_v63  ;;  %v544_v59 = vmul.f32 %v519_v32, %v419_v16  ;;  %v570_v22 = vsel %vm562_vm0, %v541_v0, 0.0  ;;  %v423_v10 = vmul.f32 %v398_v23, %v398_v23 }
  0x64   :  { %v457_v18 = vadd.f32 1e-08, %v1348_v24  ;;  %855 = vlog2.f32 %v455_v36  ;;  %v571_v57 = vadd.f32 %v570_v22, %v569_v50  ;;  %v487_v39 = vmul.f32 0.6931472, %v844_v9 }
  0x65   :  { %v522_v14 = vsub.f32 0.0, %v483_v25  ;;  %v545_v45 = vmul.f32 %v520_v7, %v420_v49  ;;  %v572_v56 = vsel %vm562_vm0, %v542_v21, 0.0  ;;  %v458_v1 = vadd.f32 1e-08, %v1350_v6 }
  0x66   :  { %v848_v20 = vpop.eup %847  ;;  %v489_v51 = vmul.f32 0.6931472, %v846_v40  ;;  %857 = vlog2.f32 %v456_v54  ;;  %v573_v16 = vadd.f32 %v572_v56, %v571_v57  ;;  %v523_v43 = vsub.f32 0.0, %v485_v38 }
  0x67   :  { %v546_v12 = vmul.f32 %v521_v61, %v421_v15  ;;  %v574_v2 = vsel %vm562_vm0, %v543_v55, 0.0  ;;  %v576_v23 = vsel %vm562_vm0, %v544_v59, 0.0  ;;  %v424_v27 = vmul.f32 %v399_v5, %v399_v5 }
  0x68   :  { %v850_v58 = vpop.eup %849  ;;  %v459_v49 = vadd.f32 1e-08, %v1353_v8  ;;  %859 = vlog2.f32 %v457_v18  ;;  %v575_v30 = vadd.f32 %v574_v2, %v573_v16  ;;  %v491_v29 = vmul.f32 0.6931472, %v848_v20 }
  0x69   :  { %v524_v31 = vsub.f32 0.0, %v487_v39  ;;  %v547_v52 = vmul.f32 %v522_v14, %v422_v13  ;;  %v578_v17 = vsel %vm562_vm0, %v545_v45, 0.0  ;;  %v425_v15 = vmul.f32 %v400_v19, %v400_v19 }
  0x6a   :  { %v852_v33 = vpop.eup %851  ;;  %v460_v63 = vadd.f32 1e-08, %v1355_v34  ;;  %861 = vlog2.f32 %v458_v1  ;;  %v577_v62 = vadd.f32 %v576_v23, %v575_v30  ;;  %v493_v32 = vmul.f32 0.6931472, %v850_v58 }
  0x6b   :  { %v525_v5 = vsub.f32 0.0, %v489_v51  ;;  %v548_v0 = vmul.f32 %v523_v43, %v423_v10  ;;  %v580_v53 = vsel %vm562_vm0, %v546_v12, 0.0  ;;  %v426_v13 = vmul.f32 %v401_v28, %v401_v28 }
  0x6c   :  { %v854_v44 = vpop.eup %853  ;;  %v461_v36 = vadd.f32 1e-08, %v1357_v35  ;;  %863 = vlog2.f32 %v459_v49  ;;  %v579_v37 = vadd.f32 %v578_v17, %v577_v62  ;;  %v495_v48 = vmul.f32 0.6931472, %v852_v33 }
  0x6d   :  { %v526_v19 = vsub.f32 0.0, %v491_v29  ;;  %v549_v25 = vmul.f32 %v524_v31, %v424_v27  ;;  %v582_v7 = vsel %vm562_vm0, %v547_v52, 0.0  ;;  %v404_v46 = vsub.f32 1.0, %v1342_v4 }
  0x6e   :  { %v856_v21 = vpop.eup %855  ;;  %v427_v9 = vmul.f32 %v402_v47, %v402_v47  ;;  %865 = vlog2.f32 %v460_v63  ;;  %v581_v41 = vadd.f32 %v580_v53, %v579_v37  ;;  %v497_v54 = vmul.f32 0.6931472, %v854_v44 }
  0x6f   :  { %v527_v28 = vsub.f32 0.0, %v493_v32  ;;  %v550_v55 = vmul.f32 %v525_v5, %v425_v15  ;;  %v584_v50 = vsel %vm562_vm0, %v548_v0, 0.0  ;;  %v405_v38 = vsub.f32 1.0, %v1344_v60 }
  0x70   :  { %v858_v40 = vpop.eup %857  ;;  %v428_v61 = vmul.f32 %v403_v3, %v403_v3  ;;  %867 = vlog2.f32 %v461_v36  ;;  %v583_v4 = vadd.f32 %v582_v7, %v581_v41  ;;  %v499_v59 = vmul.f32 0.6931472, %v856_v21 }
  0x71   :  { %v528_v11 = vsub.f32 0.0, %v495_v48  ;;  %v551_v22 = vmul.f32 %v526_v19, %v426_v13  ;;  %v586_v47 = vsel %vm562_vm0, %v549_v25, 0.0  ;;  %v406_v18 = vsub.f32 1.0, %v1346_v26 }
  0x72   :  { %v860_v10 = vpop.eup %859  ;;  %v429_v57 = vmul.f32 %v404_v46, %v404_v46  ;;  %v585_v39 = vadd.f32 %v584_v50, %v583_v4  ;;  %v501_v14 = vmul.f32 0.6931472, %v858_v40  ;;  %v529_v45 = vsub.f32 0.0, %v497_v54 }
  0x73   :  { %v552_v56 = vmul.f32 %v527_v28, %v427_v9  ;;  %v588_v60 = vsel %vm562_vm0, %v550_v55, 0.0  ;;  %v407_v3 = vsub.f32 1.0, %v1348_v24  ;;  %v430_v20 = vmul.f32 %v405_v38, %v405_v38 }
  0x74   :  { %v862_v42 = vpop.eup %861  ;;  %v587_v1 = vadd.f32 %v586_v47, %v585_v39  ;;  %v503_v51 = vmul.f32 0.6931472, %v860_v10  ;;  %v530_v16 = vsub.f32 0.0, %v499_v59  ;;  %v553_v43 = vmul.f32 %v528_v11, %v428_v61 }
  0x75   :  { %v590_v12 = vsel %vm562_vm0, %v551_v22, 0.0  ;;  %v408_v26 = vsub.f32 1.0, %v1350_v6  ;;  %v431_v23 = vmul.f32 %v406_v18, %v406_v18  ;;  %v505_v27 = vmul.f32 0.6931472, %v862_v42 }
  0x76   :  { %v864_v2 = vpop.eup %863  ;;  %v589_v58 = vadd.f32 %v588_v60, %v587_v1  ;;  %v531_v49 = vsub.f32 0.0, %v501_v14  ;;  %v554_v30 = vmul.f32 %v529_v45, %v429_v57  ;;  %v592_v29 = vsel %vm562_vm0, %v552_v56, 0.0 }
  0x77   :  { %v409_v24 = vsub.f32 1.0, %v1353_v8  ;;  %v432_v52 = vmul.f32 %v407_v3, %v407_v3  ;;  %v507_v33 = vmul.f32 0.6931472, %v864_v2  ;;  %v532_v15 = vsub.f32 0.0, %v503_v51 }
  0x78   :  { %v866_v31 = vpop.eup %865  ;;  %v591_v17 = vadd.f32 %v590_v12, %v589_v58  ;;  %v555_v63 = vmul.f32 %v530_v16, %v430_v20  ;;  %v594_v62 = vsel %vm562_vm0, %v553_v43, 0.0  ;;  %v410_v6 = vsub.f32 1.0, %v1355_v34 }
  0x79   :  { %v433_v5 = vmul.f32 %v408_v26, %v408_v26  ;;  %v509_v53 = vmul.f32 0.6931472, %v866_v31  ;;  %v533_v44 = vsub.f32 0.0, %v505_v27  ;;  %v556_v13 = vmul.f32 %v531_v49, %v431_v23 }
  0x7a   :  { %v868_v32 = vpop.eup %867  ;;  %v593_v0 = vadd.f32 %v592_v29, %v591_v17  ;;  %v596_v36 = vsel %vm562_vm0, %v554_v30, 0.0  ;;  %v411_v37 = vsub.f32 1.0, %v1357_v35  ;;  %v434_v8 = vmul.f32 %v409_v24, %v409_v24 }
  0x7b   :  { %v511_v19 = vmul.f32 0.6931472, %v868_v32  ;;  %v534_v25 = vsub.f32 0.0, %v507_v33  ;;  %v557_v7 = vmul.f32 %v532_v15, %v432_v52  ;;  %v598_v21 = vsel %vm562_vm0, %v555_v63, 0.0 }
  0x7c   :  { %v595_v48 = vadd.f32 %v594_v62, %v593_v0  ;;  %v435_v9 = vmul.f32 %v410_v6, %v410_v6  ;;  %v535_v41 = vsub.f32 0.0, %v509_v53  ;;  %v558_v34 = vmul.f32 %v533_v44, %v433_v5 }
  0x7d   :  { %v600_v54 = vsel %vm562_vm0, %v556_v13, 0.0  ;;  %v436_v55 = vmul.f32 %v411_v37, %v411_v37  ;;  %v536_v50 = vsub.f32 0.0, %v511_v19  ;;  %v559_v40 = vmul.f32 %v534_v25, %v434_v8 }
  0x7e   :  { %v597_v46 = vadd.f32 %v596_v36, %v595_v48  ;;  %v602_v38 = vsel %vm562_vm0, %v557_v7, 0.0  ;;  %v560_v61 = vmul.f32 %v535_v41, %v435_v9  ;;  %v604_v4 = vsel %vm562_vm0, %v558_v34, 0.0 }
  0x7f   :  { %v561_v11 = vmul.f32 %v536_v50, %v436_v55  ;;  %v606_v22 = vsel %vm562_vm0, %v559_v40, 0.0 }
  0x80   :  { %v599_v28 = vadd.f32 %v598_v21, %v597_v46  ;;  %v608_v10 = vsel %vm562_vm0, %v560_v61, 0.0 }
  0x81   :  { %v610_v57 = vsel %vm562_vm0, %v561_v11, 0.0 }
  0x82   :  { %v601_v35 = vadd.f32 %v600_v54, %v599_v28 }
  0x84   :  { %v603_v59 = vadd.f32 %v602_v38, %v601_v35 }
  0x86   :  { %v605_v47 = vadd.f32 %v604_v4, %v603_v59 }
  0x88   :  { %v607_v18 = vadd.f32 %v606_v22, %v605_v47 }
  0x8a   :  { %v609_v39 = vadd.f32 %v608_v10, %v607_v18 }
  0x8c   :  { %v611_v14 = vadd.f32 %v610_v57, %v609_v39 }
  0x8e   :  { %v612_v45 = vrot.slane %v611_v14, 4 }
  0x90   :  { %v613_v56 = vadd.f32 %v612_v45, %v611_v14 }
  0x92   :  { %v614_v60 = vrot.slane %v613_v56, 2 }
  0x94   :  { %v615_v42 = vadd.f32 %v614_v60, %v613_v56 }
  0x96   :  { %v616_v3 = vrot.slane %v615_v42, 1 }
  0x98   :  { %v617_v20 = vadd.f32 %v616_v3, %v615_v42 }
  0x9a   :  { %619 = vst.msk [vmem:[#allocation2] sm:$0x1] %vm618_vm1, %v617_v20 }
  0x9b   :  { %880 = shalt.err (!%p877_p4)
}
  0x9c   :  { %s881_s21 = scalar_lea.hbm %s1460_s2, 16 }
  0x9d   :  { %p882_p5 = scmp.ne.s32.totalorder %s1460_s2, %s881_s21  ;;  %p885_p6 = scmp.lt.u32.totalorder %s881_s21, %s1460_s2 }
  0x9f   :  { %p887_p7 = pnand %p885_p6, %p882_p5 }
  0xa1   :  { %890 = shalt.err (!%p887_p7)
}
  0xa2   :  { %629 = dma.vmem_to_hbm [thread:$0]  %s627_s16, 16, %s1460_s2, [#allocation3]  }
  0xa3   :  { %891 = dma.done.wait [#allocation3], 16  }
  0xa4   :  { %892 = vsyncadd [#allocation3], 4294967280 }
  0xa5   :  { %633 = vsyncpa [#allocation3], 1 }

</bundles_post_ra>
